<compile_context>
chip_gen: v5e
topology: v5e:2x2
jax: 0.10.0
libtpu: 0.0.40
codegen_flags: <defaults>
</compile_context>

<pallas_src>
import functools

import jax
import jax.numpy as jnp
import numpy as np
from jax import lax
from jax.experimental import pallas as pl
from jax.experimental.pallas import tpu as pltpu


def _round_up(x, m):
    return ((x + m - 1) // m) * m


def _vmem_capacity_bytes():
    try:
        return int(pltpu.get_tpu_info().vmem_capacity_bytes)
    except Exception:
        return 64 * 1024 * 1024  # conservative fallback: v7x per-TensorCore VMEM


def _make_simple_kernel(activation, compute_dtype):
    """No K-tiling: one MXU matmul + bias + activation per (M, N) tile."""

    def kernel(x_ref, w_ref, b_ref, o_ref):
        xb = x_ref[...].astype(compute_dtype)           # in-kernel cast (hidden under MXU)
        wb = w_ref[...].astype(compute_dtype)
        # x: (tm, din), w: (tn, din)  -> contract last axes (natural nn.Linear
        # layout; no wrapper-side transpose of the weight).
        h = lax.dot_general(xb, wb, (((1,), (1,)), ((), ())),
                            preferred_element_type=jnp.float32)
        h = h + b_ref[...]                               # bias broadcast over rows (f32)
        if activation is not None:
            h = activation(h)
        o_ref[...] = h.astype(o_ref.dtype)

    return kernel


def _make_ktiled_kernel(activation, compute_dtype):
    """K-tiled: f32 VMEM accumulator; bias/activation only in the K epilogue."""

    def kernel(x_ref, w_ref, b_ref, o_ref, acc_ref):
        k = pl.program_id(2)

        @pl.when(k == 0)
        def _():
            acc_ref[...] = jnp.zeros_like(acc_ref)

        xb = x_ref[...].astype(compute_dtype)
        wb = w_ref[...].astype(compute_dtype)
        acc_ref[...] += lax.dot_general(xb, wb, (((1,), (1,)), ((), ())),
                                        preferred_element_type=jnp.float32)

        @pl.when(k == pl.num_programs(2) - 1)
        def _():
            h = acc_ref[...] + b_ref[...]
            if activation is not None:
                h = activation(h)
            o_ref[...] = h.astype(o_ref.dtype)

    return kernel


def non_linear(x, weight, bias=None, activation=None, *,
               tile_m=512, compute_dtype=jnp.bfloat16, out_dtype=None):
    """Forward pass of NonLinear: activation(x @ weight.T + bias).

    x:          (..., input_size) array
    weight:     (output_size, input_size)  (natural nn.Linear layout; not copied)
    bias:       (output_size,) or None
    activation: None or a JAX-traceable elementwise callable.
    compute_dtype: MXU operand dtype.  bf16 by default (fast path on v6e/v7x);
        pass jnp.float32 for exact f32 parity with the PyTorch module.
    out_dtype:  output dtype (defaults to x.dtype; pass bf16 to halve writeback).
    """
    *lead, din = x.shape
    dout, din_w = weight.shape
    assert din_w == din, "weight must be (output_size, input_size)"
    M = int(np.prod(lead)) if lead else 1
    out_dtype = x.dtype if out_dtype is None else out_dtype

    x_bytes = jnp.dtype(x.dtype).itemsize
    w_bytes = jnp.dtype(weight.dtype).itemsize
    o_bytes = jnp.dtype(out_dtype).itemsize
    c_bytes = jnp.dtype(compute_dtype).itemsize

    # ---- generation-aware VMEM budget (64 MiB/TC v7x, 128 MiB v5e/v6e) ------
    vmem_cap = _vmem_capacity_bytes()
    vmem_limit = max(32 << 20, min(vmem_cap - (16 << 20), 112 << 20))
    budget = int(vmem_limit * 0.75)          # headroom for compiler internal scratch

    # ---- tile selection ------------------------------------------------------
    tm = min(_round_up(max(M, 1), 8), _round_up(tile_m, 8))
    tn = dout if dout <= 1024 else 512       # lane-dense (multiple of 128) when tiled

    def vmem_need(tk, w_bufs):
        return (2 * tm * tk * x_bytes                    # x double-buffer
                + w_bufs * tn * tk * w_bytes             # weight buffers
                + 2 * tn * 4                             # bias
                + 2 * tm * tn * o_bytes                  # output double-buffer
                + tm * tn * 4                            # f32 accumulator / h
                + (tm + tn) * tk * c_bytes)              # in-kernel cast temporaries

    tk = din
    if vmem_need(tk, 2) > budget:
        # K-tiling only with a tk that divides din exactly (ragged K would feed
        # garbage into the contraction).
        for cand in (2048, 1024, 512, 256, 128):
            if cand < din and din % cand == 0 and vmem_need(cand, 2) <= budget:
                tk = cand
                break
    while vmem_need(tk, 2) > budget and tm > 8:
        tm = max(8, _round_up(tm // 2, 8))

    gm = pl.cdiv(M, tm)
    gn = pl.cdiv(dout, tn)
    nk = pl.cdiv(din, tk)                    # == din // tk when nk > 1

    # ---- operands: no transposes / pads / casts in the hot path -------------
    x2d = x.reshape(M, din)                  # metadata-only for contiguous x
    if bias is None:
        b2d = jnp.zeros((1, dout), jnp.float32)
    else:
        b2d = bias.reshape(1, dout).astype(jnp.float32)   # tiny (dout elements)

    cost = pl.CostEstimate(
        flops=2 * M * din * dout,
        transcendentals=(M * dout if activation is not None else 0),
        bytes_accessed=(M * din * x_bytes + dout * din * w_bytes
                        + dout * 4 + M * dout * o_bytes),
    )

    if nk == 1:
        kernel = _make_simple_kernel(activation, compute_dtype)
        grid = (gm, gn)
        # Grid-invariant weight (gn == 1) is fetched once; single-buffer it when
        # the slab is large enough that the second buffer actually costs VMEM.
        if gn == 1 and din * dout * w_bytes >= (4 << 20):
            w_spec = pl.BlockSpec((tn, din), lambda i, j: (j, 0),
                                  pipeline_mode=pl.Buffered(1))
        else:
            w_spec = pl.BlockSpec((tn, din), lambda i, j: (j, 0))
        in_specs = [
            pl.BlockSpec((tm, din), lambda i, j: (i, 0)),   # x row tile
            w_spec,                                          # weight (natural layout)
            pl.BlockSpec((1, tn), lambda i, j: (0, j)),      # bias (tiny)
        ]
        out_specs = pl.BlockSpec((tm, tn), lambda i, j: (i, j))
        scratch_shapes = []
        semantics = ("parallel", "parallel")
    else:
        kernel = _make_ktiled_kernel(activation, compute_dtype)
        grid = (gm, gn, nk)
        in_specs = [
            pl.BlockSpec((tm, tk), lambda i, j, k: (i, k)),
            pl.BlockSpec((tn, tk), lambda i, j, k: (j, k)),
            pl.BlockSpec((1, tn), lambda i, j, k: (0, j)),
        ]
        out_specs = pl.BlockSpec((tm, tn), lambda i, j, k: (i, j))
        scratch_shapes = [pltpu.VMEM((tm, tn), jnp.float32)]
        semantics = ("parallel", "parallel", "arbitrary")

    out = pl.pallas_call(
        kernel,
        grid=grid,
        in_specs=in_specs,
        out_specs=out_specs,
        out_shape=jax.ShapeDtypeStruct((M, dout), out_dtype),
        scratch_shapes=scratch_shapes,
        compiler_params=pltpu.CompilerParams(
            dimension_semantics=semantics,
            vmem_limit_bytes=vmem_limit,
        ),
        cost_estimate=cost,
    )(x2d, weight, b2d)

    return out.reshape(*lead, dout)


if __name__ == "__main__":
    key = jax.random.PRNGKey(0)
    B, S, DIN, DOUT = 2, 8, 32, 32
    kx, kw, kb = jax.random.split(key, 3)

    x = jax.random.normal(kx, (B, S, DIN), jnp.float32)
    # deterministic nn.Linear-style init: U(-1/sqrt(in), 1/sqrt(in))
    bound = 1.0 / np.sqrt(DIN)
    weight = jax.random.uniform(kw, (DOUT, DIN), jnp.float32, -bound, bound)
    bias = jax.random.uniform(kb, (DOUT,), jnp.float32, -bound, bound)

    ref_lin = x @ weight.T + bias

    # Case 1: module default (activation=None) -> plain nn.Linear.
    out_lin = jax.block_until_ready(non_linear(x, weight, bias, activation=None))
    assert out_lin.shape == (B, S, DOUT) and out_lin.dtype == jnp.float32
    assert np.allclose(np.asarray(out_lin), np.asarray(ref_lin), atol=2e-2, rtol=2e-2)

    # Case 2: exact (erf-based) GELU activation, like torch.nn.GELU().
    # TODO(synk): use approximate=True (tanh / EUP path) when the consumer allows it.
    gelu = functools.partial(jax.nn.gelu, approximate=False)
    out_act = jax.block_until_ready(non_linear(x, weight, bias, activation=gelu))
    ref_act = jax.nn.gelu(ref_lin, approximate=False)
    assert out_act.shape == (B, S, DOUT)
    assert np.allclose(np.asarray(out_act), np.asarray(ref_act), atol=2e-2, rtol=2e-2)

    # Case 3: bias=False configuration of the module.
    out_nb = jax.block_until_ready(non_linear(x, weight, None, activation=None))
    assert np.allclose(np.asarray(out_nb), np.asarray(x @ weight.T), atol=2e-2, rtol=2e-2)

    print("KERNEL_OK")
</pallas_src>

<mosaic_0001>
module attributes {stable_mosaic.version = 11 : i64} {
  func.func @kernel(%arg0: i32, %arg1: i32, %arg2: memref<16x32xf32, #tpu.memory_space<vmem>>, %arg3: memref<32x32xf32, #tpu.memory_space<vmem>>, %arg4: memref<1x32xf32, #tpu.memory_space<vmem>>, %arg5: memref<16x32xf32, #tpu.memory_space<vmem>>) attributes {dimension_semantics = [#tpu.dimension_semantics<parallel>, #tpu.dimension_semantics<parallel>], iteration_bounds = array<i64: 1, 1>, scalar_prefetch = 0 : i64, scratch_operands = 0 : i64, tpu.core_type = #tpu.core_type<tc>, window_params = [{transform_indices = @transform_0, window_bounds = array<i64: 16, 32>}, {transform_indices = @transform_1, window_bounds = array<i64: 32, 32>}, {transform_indices = @transform_2, window_bounds = array<i64: 1, 32>}, {transform_indices = @transform_3, window_bounds = array<i64: 16, 32>}]} {
    %c0 = arith.constant 0 : index
    %c0_0 = arith.constant 0 : index
    %0 = vector.load %arg2[%c0, %c0_0] : memref<16x32xf32, #tpu.memory_space<vmem>>, vector<16x32xf32>
    %1 = arith.truncf %0 : vector<16x32xf32> to vector<16x32xbf16>
    %c0_1 = arith.constant 0 : index
    %c0_2 = arith.constant 0 : index
    %2 = vector.load %arg3[%c0_1, %c0_2] : memref<32x32xf32, #tpu.memory_space<vmem>>, vector<32x32xf32>
    %3 = arith.truncf %2 : vector<32x32xf32> to vector<32x32xbf16>
    %cst = arith.constant dense<0.000000e+00> : vector<16x32xf32>
    %4 = tpu.matmul %1, %3, %cst {dimension_numbers = #tpu.dot_dimension_numbers<[1], [1], [0], [0], [0, 0, 1, 0], [], []>} : vector<16x32xbf16>, vector<32x32xbf16>, vector<16x32xf32> -> vector<16x32xf32>
    %c0_3 = arith.constant 0 : index
    %c0_4 = arith.constant 0 : index
    %5 = vector.load %arg4[%c0_3, %c0_4] : memref<1x32xf32, #tpu.memory_space<vmem>>, vector<1x32xf32>
    %6 = vector.broadcast %5 : vector<1x32xf32> to vector<16x32xf32>
    %7 = arith.addf %4, %6 : vector<16x32xf32>
    %c0_5 = arith.constant 0 : index
    %c0_6 = arith.constant 0 : index
    %8 = vector.load %arg5[%c0_5, %c0_6] : memref<16x32xf32, #tpu.memory_space<vmem>>, vector<16x32xf32>
    tpu.vector_store %arg5[%c0_5, %c0_6], %7 {strides = array<i32>} : memref<16x32xf32, #tpu.memory_space<vmem>>, vector<16x32xf32>,
    return
  }
  func.func @transform_0(%arg0: i32, %arg1: i32) -> (i32, i32) {
    %c0_i32 = arith.constant 0 : i32
    %c0_i32_0 = arith.constant 0 : i32
    return %arg0, %c0_i32 : i32, i32
  }
  func.func @transform_1(%arg0: i32, %arg1: i32) -> (i32, i32) {
    %c0_i32 = arith.constant 0 : i32
    %c0_i32_0 = arith.constant 0 : i32
    return %arg1, %c0_i32 : i32, i32
  }
  func.func @transform_2(%arg0: i32, %arg1: i32) -> (i32, i32) {
    %c0_i32 = arith.constant 0 : i32
    %c0_i32_0 = arith.constant 0 : i32
    return %c0_i32, %arg1 : i32, i32
  }
  func.func @transform_3(%arg0: i32, %arg1: i32) -> (i32, i32) {
    %c0_i32 = arith.constant 0 : i32
    return %arg0, %arg1 : i32, i32
  }
}

</mosaic_0001>

<bundles_post_ra>
// kernel: tpu_custom_call.1
= control target key start
LH: loop header
LB: loop body
LE: loop exit
PB: predicated region body
PF: predicated region fallthrough
CT: control target
= control target key end

     0   :  { %8 = vsyncpa [#allocation3], 0  ;;  %s243_s0 = inlined_call_operand.hbm [shape: f32[16,32], index: 0, kind: input, shape index: {}]   ;;  %s244_s1 = inlined_call_operand.hbm [shape: f32[32,32], index: 1, kind: input, shape index: {}]   ;;  %s245_s2 = inlined_call_operand.vmem [shape: f32[1,32], index: 2, kind: input, shape index: {}]   ;;  %s246_s3 = inlined_call_operand.hbm [shape: f32[16,32], index: 3, kind: output, shape index: {}]  }
   0x1   :  { %9 = vsyncpa [#allocation6], 0 }
   0x2   :  { %10 = vsyncpa [#allocation4], 0  ;;  %s15_s14 = sshll.u32 %s243_s0, 4  ;;  %s192_s15 = smov [#allocation2]   ;;  %s16_s14 = int_to_ptr.hbm [resolvable:$true] %s15_s14 }
   0x3   :  { %s17_s16 = sshll.u32 %s192_s15, 4  ;;  %s28_s19 = sshll.u32 %s244_s1, 4  ;;  %s18_s16 = int_to_ptr.vmem [resolvable:$true] %s17_s16  ;;  %s29_s19 = int_to_ptr.hbm [resolvable:$true] %s28_s19 }
   0x4   :  { %s193_s20 = smov 128   ;;  %s194_s21 = smov 8  }
   0x5   :  { %23 = dma.hbm_to_vmem [thread:$0]  %s16_s14, 256, %s18_s16, [#allocation3], %s193_s20, %s193_s20, %s194_s21  }
   0x6   :  { %s195_s22 = smov [#allocation5]  }
   0x7   :  { %s30_s23 = sshll.u32 %s195_s22, 4  ;;  %s31_s23 = int_to_ptr.vmem [resolvable:$true] %s30_s23 }
   0x8   :  { %36 = dma.hbm_to_vmem [thread:$0]  %s29_s19, 512, %s31_s23, [#allocation6], %s193_s20, %s193_s20, %s194_s21  }
   0x9   :  { %186 = dma.done.wait [#allocation3], 256  }
   0xa   :  { %187 = vsyncadd [#allocation3], 4294967040 }
   0xb   :  { %188 = dma.done.wait [#allocation6], 512  }
   0xc   :  { %189 = vsyncadd [#allocation6], 4294966784  ;;  %v53_v0 = vld [vmem:[#allocation5 + $0x10] sm:$0xff]  ;;  %v54_v1 = vld [vmem:[#allocation5 + $0x18] sm:$0xff]  ;;  %vm61_vm0 = vcmask 261120   ;;  %s196_s24 = smov [#allocation7]  }
   0xd   :  { %v56_v2 = vpack.c.bf16 %v54_v1, %v53_v0  ;;  %v51_v3 = vld [vmem:[#allocation5] sm:$0xff]  ;;  %v52_v4 = vld [vmem:[#allocation5 + $0x8] sm:$0xff]  ;;  %v48_v8 = vld [vmem:[#allocation2] sm:$0xff]  ;;  %s91_s25 = sshll.u32 %s196_s24, 4  ;;  %s93_s28 = sshll.u32 %s246_s3, 4  ;;  %s92_s25 = int_to_ptr.vmem [resolvable:$true] %s91_s25  ;;  %s94_s28 = int_to_ptr.hbm [resolvable:$true] %s93_s28 }
   0xe   :  { %v55_v6 = vpack.c.bf16 %v52_v4, %v51_v3  ;;  %v49_v9 = vld [vmem:[#allocation2 + $0x8] sm:$0xff]  ;;  %v113_v11 = vld [vmem:[%s245_s2] ss:$0 sm:$0xff] }
   0xf   :  { %v69_v5 = vsel %vm61_vm0, %v56_v2, 0  ;;  %v50_v10 = vpack.c.bf16 %v49_v9, %v48_v8 }
  0x10   :  { %77 = vmatpush.bf16.xpose.msra.mxu0 %v69_v5  ;;  %v66_v7 = vsel %vm61_vm0, %v55_v6, 0 }
  0x18   :  { %78 = vmatpush.bf16.xpose.msra.mxu0 %v66_v7 }
  0x1f   :  { %107 = vmatmul.msk.bf16.vlgmr.msra.gmra.mxu0 %vm61_vm0, %v50_v10 }
  0x9c   :  { %v80_v12 = vpop.f32.mrf.mxu0 }
  0x9d   :  { %v81_v13 = vadd.f32 %v113_v11, %v80_v12 }
  0x9f   :  { %85 = vst.msk [vmem:[#allocation7] sm:$0xff] %vm61_vm0, %v81_v13 }
  0xa4   :  { %v82_v14 = vpop.f32.mrf.mxu0 }
  0xa5   :  { %v83_v15 = vadd.f32 %v113_v11, %v82_v14 }
  0xa7   :  { %86 = vst.msk [vmem:[#allocation7 + $0x8] sm:$0xff] %vm61_vm0, %v83_v15 }
  0xa8   :  { %99 = dma.vmem_to_hbm [thread:$0]  %s92_s25, 256, %s94_s28, [#allocation4], %s193_s20, %s193_s20, %s194_s21  }
  0xa9   :  { %190 = dma.done.wait [#allocation4], 256  }
  0xaa   :  { %191 = vsyncadd [#allocation4], 4294967040 }
  0xab   :  { %104 = vsyncpa [#allocation3], 1 }
  0xac   :  { %105 = vsyncpa [#allocation6], 1 }
  0xad   :  { %106 = vsyncpa [#allocation4], 1 }

</bundles_post_ra>
